<compile_context>
chip_gen: v5e
topology: v5e:2x2
jax: 0.10.0
libtpu: 0.0.40
codegen_flags: <defaults>
</compile_context>

<pallas_src>
import jax
import jax.numpy as jnp
from jax.experimental import pallas as pl
from jax.experimental.pallas import tpu as pltpu

_BN_EPS = 1e-5


def _skip_kernel(xc_ref, w_ref, scale_ref, shift_ref, o_ref):
    """One lane tile per grid step.

    xc_ref    : (2*Cin, TL)   channel-stacked gathered input [x1 ; x2]
    w_ref     : (Cout, 2*Cin) block-diagonal 1x1-conv weight (VMEM resident)
    scale_ref : (Cout, 1)     folded BN scale (VMEM resident)
    shift_ref : (Cout, 1)     folded BN shift (VMEM resident)
    o_ref     : (Cout, TL)
    """
    x = jnp.maximum(xc_ref[...].astype(jnp.float32), 0.0)               # ReLU (VPU)
    y = jnp.dot(w_ref[...].astype(jnp.float32), x,
                preferred_element_type=jnp.float32)                     # both 1x1 convs (MXU)
    # Fused inference BatchNorm + single full-block (unmasked) store.
    o_ref[...] = (y * scale_ref[...] + shift_ref[...]).astype(o_ref.dtype)


def skip_connection(x, w1, w2, gamma, beta, running_mean, running_var, *, stride):
    """x: (N, Cin, H, W). w1, w2: (Cout//2, Cin). BN params: (Cout,). Returns (N, Cout, Ho, Wo)."""
    n, cin, h, w = x.shape
    ch = w1.shape[0]
    cout = 2 * ch
    ho = (h - 1) // stride + 1
    wo = (w - 1) // stride + 1

    # --- spatial gathers in the wrapper (pure layout; ReLU commutes with them) ---
    x1 = x[:, :, ::stride, ::stride]                                        # (N, Cin, Ho, Wo)
    x2 = jnp.pad(x[:, :, 1:, 1:],
                 ((0, 0), (0, 0), (0, 1), (0, 1)))[:, :, ::stride, ::stride]
    xc = jnp.concatenate([x1, x2], axis=1)                                  # (N, 2Cin, Ho, Wo)

    # Flatten batch+spatial onto the lane axis: (2Cin, L) with L = N*Ho*Wo.
    l = n * ho * wo
    xc = jnp.transpose(xc, (1, 0, 2, 3)).reshape(2 * cin, l)

    # Lane-dense tiling: pad L to a multiple of 128 and pick the widest tile
    # (<= 1024) that divides it; the padded tail is zeros and is sliced off after.
    lp = pl.cdiv(l, 128) * 128
    tl = next(t for t in (1024, 512, 384, 256, 128) if lp % t == 0)
    if lp != l:
        xc = jnp.pad(xc, ((0, 0), (0, lp - l)))

    # Block-diagonal weight: one matmul realizes conv1 on [x1] and conv2 on [x2],
    # and the channel concat falls out of the row layout.
    wbd = jnp.zeros((cout, 2 * cin), jnp.float32)
    wbd = wbd.at[:ch, :cin].set(w1.astype(jnp.float32))
    wbd = wbd.at[ch:, cin:].set(w2.astype(jnp.float32))

    # Fold inference BatchNorm into per-channel scale/shift (one-time, in XLA).
    scale = (gamma / jnp.sqrt(running_var + _BN_EPS)).astype(jnp.float32).reshape(cout, 1)
    shift = (beta - running_mean * scale[:, 0]).astype(jnp.float32).reshape(cout, 1)

    def resident(shape):
        # Constant index_map -> DMA'd once, kept VMEM-resident across the lane grid.
        return pl.BlockSpec(shape, lambda i: (0,) * len(shape))

    out2 = pl.pallas_call(
        _skip_kernel,
        out_shape=jax.ShapeDtypeStruct((cout, lp), x.dtype),
        grid=(lp // tl,),
        in_specs=[
            pl.BlockSpec((2 * cin, tl), lambda i: (0, i)),   # input lane tile
            resident((cout, 2 * cin)),                       # block-diagonal conv weight
            resident((cout, 1)),                             # folded BN scale
            resident((cout, 1)),                             # folded BN shift
        ],
        out_specs=pl.BlockSpec((cout, tl), lambda i: (0, i)),
        compiler_params=pltpu.CompilerParams(
            dimension_semantics=("parallel",)),              # independent lane tiles (v7x megacore)
    )(xc, wbd, scale, shift)

    out = out2[:, :l].reshape(cout, n, ho, wo)
    return jnp.transpose(out, (1, 0, 2, 3))                  # (N, Cout, Ho, Wo)


def _reference(x, w1, w2, gamma, beta, mean, var, *, stride, eps=_BN_EPS):
    """Pure-JAX reference of the PyTorch forward (eval-mode BN)."""
    xr = jnp.maximum(x, 0.0)
    y1 = xr[:, :, ::stride, ::stride]
    xs = jnp.pad(xr[:, :, 1:, 1:], ((0, 0), (0, 0), (0, 1), (0, 1)))
    y2 = xs[:, :, ::stride, ::stride]
    y1 = jnp.einsum('oc,nchw->nohw', w1, y1, precision=jax.lax.Precision.HIGHEST)
    y2 = jnp.einsum('oc,nchw->nohw', w2, y2, precision=jax.lax.Precision.HIGHEST)
    z = jnp.concatenate([y1, y2], axis=1)
    scale = gamma / jnp.sqrt(var + eps)
    shift = beta - mean * scale
    return z * scale[None, :, None, None] + shift[None, :, None, None]


if __name__ == "__main__":
    # SkipConnection(in_channels=4, out_channels=8, stride=2) on a (2, 4, 16, 16) input.
    N, C_IN, H, W = 2, 4, 16, 16
    C_OUT = 8
    CH = C_OUT // 2

    key = jax.random.PRNGKey(0)
    kx, k1, k2, kg, kb, km, kv = jax.random.split(key, 7)

    x = jax.random.normal(kx, (N, C_IN, H, W), dtype=jnp.float32)

    bound = 1.0 / (C_IN ** 0.5)  # PyTorch Conv2d default init bound for 1x1 kernels
    w1 = jax.random.uniform(k1, (CH, C_IN), jnp.float32, -bound, bound)  # conv1.weight[:, :, 0, 0]
    w2 = jax.random.uniform(k2, (CH, C_IN), jnp.float32, -bound, bound)  # conv2.weight[:, :, 0, 0]

    gamma = jax.random.uniform(kg, (C_OUT,), jnp.float32, 0.5, 1.5)        # bn.weight
    beta = jax.random.normal(kb, (C_OUT,), jnp.float32) * 0.1              # bn.bias
    running_mean = jax.random.normal(km, (C_OUT,), jnp.float32) * 0.5      # bn.running_mean
    running_var = jax.random.uniform(kv, (C_OUT,), jnp.float32, 0.5, 1.5)  # bn.running_var

    for stride in (2, 1):
        out = skip_connection(x, w1, w2, gamma, beta, running_mean, running_var,
                              stride=stride)
        out = jax.block_until_ready(out)
        ref = _reference(x, w1, w2, gamma, beta, running_mean, running_var,
                         stride=stride)
        ho = (H - 1) // stride + 1
        wo = (W - 1) // stride + 1
        assert out.shape == (N, C_OUT, ho, wo)
        assert jnp.allclose(out, ref, atol=2e-5, rtol=2e-5), \
            f"mismatch vs reference (stride={stride})"

    print("KERNEL_OK")
</pallas_src>

<mosaic_0001>
module attributes {stable_mosaic.version = 11 : i64} {
  func.func @_skip_kernel(%arg0: i32, %arg1: memref<8x128xf32, #tpu.memory_space<vmem>>, %arg2: memref<8x8xf32, #tpu.memory_space<vmem>>, %arg3: memref<8x1xf32, #tpu.memory_space<vmem>>, %arg4: memref<8x1xf32, #tpu.memory_space<vmem>>, %arg5: memref<8x128xf32, #tpu.memory_space<vmem>>) attributes {dimension_semantics = [#tpu.dimension_semantics<parallel>], iteration_bounds = array<i64: 1>, scalar_prefetch = 0 : i64, scratch_operands = 0 : i64, tpu.core_type = #tpu.core_type<tc>, window_params = [{transform_indices = @transform_0, window_bounds = array<i64: 8, 128>}, {pipeline_mode = #tpu.pipeline_mode<synchronous>, transform_indices = @transform_1, window_bounds = array<i64: 8, 8>}, {pipeline_mode = #tpu.pipeline_mode<synchronous>, transform_indices = @transform_2, window_bounds = array<i64: 8, 1>}, {pipeline_mode = #tpu.pipeline_mode<synchronous>, transform_indices = @transform_3, window_bounds = array<i64: 8, 1>}, {transform_indices = @transform_4, window_bounds = array<i64: 8, 128>}]} {
    %c0 = arith.constant 0 : index
    %c0_0 = arith.constant 0 : index
    %0 = vector.load %arg1[%c0, %c0_0] : memref<8x128xf32, #tpu.memory_space<vmem>>, vector<8x128xf32>
    %cst = arith.constant 0.000000e+00 : f32
    %1 = vector.broadcast %cst : f32 to vector<8x128xf32>
    %2 = arith.maximumf %0, %1 : vector<8x128xf32>
    %c0_1 = arith.constant 0 : index
    %c0_2 = arith.constant 0 : index
    %3 = vector.load %arg2[%c0_1, %c0_2] : memref<8x8xf32, #tpu.memory_space<vmem>>, vector<8x8xf32>
    %cst_3 = arith.constant dense<0.000000e+00> : vector<8x128xf32>
    %4 = tpu.matmul %3, %2, %cst_3 {dimension_numbers = #tpu.dot_dimension_numbers<[1], [0], [0], [1], [0, 0, 1, 1], [], []>} : vector<8x8xf32>, vector<8x128xf32>, vector<8x128xf32> -> vector<8x128xf32>
    %c0_4 = arith.constant 0 : index
    %c0_5 = arith.constant 0 : index
    %5 = vector.load %arg3[%c0_4, %c0_5] : memref<8x1xf32, #tpu.memory_space<vmem>>, vector<8x1xf32>
    %6 = vector.broadcast %5 : vector<8x1xf32> to vector<8x128xf32>
    %7 = arith.mulf %4, %6 : vector<8x128xf32>
    %c0_6 = arith.constant 0 : index
    %c0_7 = arith.constant 0 : index
    %8 = vector.load %arg4[%c0_6, %c0_7] : memref<8x1xf32, #tpu.memory_space<vmem>>, vector<8x1xf32>
    %9 = vector.broadcast %8 : vector<8x1xf32> to vector<8x128xf32>
    %10 = arith.addf %7, %9 : vector<8x128xf32>
    %c0_8 = arith.constant 0 : index
    %c0_9 = arith.constant 0 : index
    %11 = vector.load %arg5[%c0_8, %c0_9] : memref<8x128xf32, #tpu.memory_space<vmem>>, vector<8x128xf32>
    tpu.vector_store %arg5[%c0_8, %c0_9], %10 {strides = array<i32>} : memref<8x128xf32, #tpu.memory_space<vmem>>, vector<8x128xf32>,
    return
  }
  func.func @transform_0(%arg0: i32) -> (i32, i32) {
    %c0_i32 = arith.constant 0 : i32
    %c0_i32_0 = arith.constant 0 : i32
    return %c0_i32, %arg0 : i32, i32
  }
  func.func @transform_1(%arg0: i32) -> (i32, i32) {
    %c0_i32 = arith.constant 0 : i32
    %c0_i32_0 = arith.constant 0 : i32
    %c0_i32_1 = arith.constant 0 : i32
    return %c0_i32, %c0_i32_0 : i32, i32
  }
  func.func @transform_2(%arg0: i32) -> (i32, i32) {
    %c0_i32 = arith.constant 0 : i32
    %c0_i32_0 = arith.constant 0 : i32
    %c0_i32_1 = arith.constant 0 : i32
    return %c0_i32, %c0_i32_0 : i32, i32
  }
  func.func @transform_3(%arg0: i32) -> (i32, i32) {
    %c0_i32 = arith.constant 0 : i32
    %c0_i32_0 = arith.constant 0 : i32
    %c0_i32_1 = arith.constant 0 : i32
    return %c0_i32, %c0_i32_0 : i32, i32
  }
  func.func @transform_4(%arg0: i32) -> (i32, i32) {
    %c0_i32 = arith.constant 0 : i32
    %c0_i32_0 = arith.constant 0 : i32
    return %c0_i32, %arg0 : i32, i32
  }
}

</mosaic_0001>

<bundles_post_ra>
// kernel: tpu_custom_call.1
= control target key start
LH: loop header
LB: loop body
LE: loop exit
PB: predicated region body
PF: predicated region fallthrough
CT: control target
= control target key end

     0   :  { %v106_v2 = vmov 0   ;;  %vm21_vm0 = vcmask 64512   ;;  %s148_s0 = inlined_call_operand.vmem [shape: f32[8,128], index: 0, kind: input, shape index: {}]   ;;  %s149_s1 = inlined_call_operand.vmem [shape: f32[8,8], index: 1, kind: input, shape index: {}]   ;;  %s150_s2 = inlined_call_operand.vmem [shape: f32[8,1], index: 2, kind: input, shape index: {}]   ;;  %s151_s3 = inlined_call_operand.vmem [shape: f32[8,1], index: 3, kind: input, shape index: {}]   ;;  %s152_s4 = inlined_call_operand.hbm [shape: f32[8,128], index: 4, kind: output, shape index: {}]  }
   0x1   :  { %v45_v0 = vld [vmem:[%s150_s2] sm:$0xff]  ;;  %79 = vset.pattern.permute.xlu0 %v106_v2 }
   0x2   :  { %v18_v1 = vld [vmem:[%s148_s0] sm:$0xff] }
   0x3   :  { %v19_v3 = vmax.f32 %v18_v1, 0.0  ;;  %v20_v4 = vld [vmem:[%s149_s1] sm:$0xff] }
   0x4   :  { %9 = vsyncpa [#allocation3], 0  ;;  %48 = vperm.xlu0 %79, %v45_v0   ;;  %v52_v5 = vld [vmem:[%s151_s3] sm:$0xff]  ;;  %s107_s0 = smov [#allocation2]   ;;  %s67_s25 = sshll.u32 %s152_s4, 4  ;;  %s68_s25 = int_to_ptr.hbm [resolvable:$true] %s67_s25 }
   0x5   :  { %40 = vmatpush.msra.mxu0 %v19_v3  ;;  %s65_s2 = sshll.u32 %s107_s0, 4  ;;  %s66_s2 = int_to_ptr.vmem [resolvable:$true] %s65_s2 }
   0x6   :  { %76 = vmatmul.msk.f32.vlgmr.msra.gmra.mxu0 %vm21_vm0, %v20_v4 }
   0xc   :  { %55 = vperm.xlu0 %79, %v52_v5  }
  0x76   :  { %v49_v6 = vpop.permute.xlu0 %48 }
  0x7e   :  { %v56_v9 = vpop.permute.xlu0 %55 }
  0x83   :  { %v42_v7 = vpop.f32.mrf.mxu0 }
  0x84   :  { %v51_v8 = vmul.f32 %v49_v6, %v42_v7 }
  0x86   :  { %v58_v10 = vadd.f32 %v56_v9, %v51_v8 }
  0x88   :  { %59 = vst [vmem:[#allocation2] sm:$0xff] %v58_v10 }
  0x89   :  { %70 = dma.vmem_to_hbm [thread:$0]  %s66_s2, 128, %s68_s25, [#allocation3]  }
  0x8a   :  { %104 = dma.done.wait [#allocation3], 128  }
  0x8b   :  { %105 = vsyncadd [#allocation3], 4294967168 }
  0x8c   :  { %75 = vsyncpa [#allocation3], 1 }

</bundles_post_ra>
